<compile_context>
chip_gen: v6e
topology: v6e:2x2x1
jax: 0.10.0
libtpu: 0.0.40
codegen_flags: <defaults>
</compile_context>

<pallas_src>
import jax
import jax.numpy as jnp
from jax import lax
from jax.experimental import pallas as pl
from jax.experimental.pallas import tpu as pltpu

_LANE = 128
_SUBLANE = 8
_TM_CAP = 512


def _round_up(x, m):
    return (x + m - 1) // m * m


def _pick_divisor_tile(hp):
    """Largest of (512, 256, 128) that divides hp (hp is a multiple of 128)."""
    for t in (512, 256, 128):
        if hp % t == 0:
            return min(t, hp)
    return hp  # unreachable


def _vmem_budget_bytes():
    """Generation-aware VMEM budget: 75% of per-core VMEM capacity."""
    cap = 64 * 1024 * 1024  # conservative default = v7x per-TC VMEM
    try:
        info = pltpu.get_tpu_info()
        cap = int(getattr(info, "vmem_capacity_bytes", cap)) or cap
    except Exception:
        pass
    return (cap * 3) // 4


# ---------------------------------------------------------------------------
# One-shot weight symmetrization (tiled).
# ---------------------------------------------------------------------------
def _symmetrize_kernel(w_ij_ref, w_ji_ref, a_ref):
    """A block (i,j) = where(col >= row, W[i,j], W[j,i].T)."""
    tb = a_ref.shape[0]
    i = pl.program_id(0)
    j = pl.program_id(1)
    row = lax.broadcasted_iota(jnp.int32, (tb, tb), 0) + i * tb
    col = lax.broadcasted_iota(jnp.int32, (tb, tb), 1) + j * tb
    a_ref[...] = jnp.where(col >= row, w_ij_ref[...], w_ji_ref[...].T)


def _symmetrize(w_bf16, hp):
    tb = _pick_divisor_tile(hp)
    nblk = hp // tb
    return pl.pallas_call(
        _symmetrize_kernel,
        out_shape=jax.ShapeDtypeStruct((hp, hp), jnp.bfloat16),
        grid_spec=pltpu.PrefetchScalarGridSpec(
            num_scalar_prefetch=0,
            grid=(nblk, nblk),
            in_specs=[
                pl.BlockSpec((tb, tb), lambda i, j: (i, j)),
                pl.BlockSpec((tb, tb), lambda i, j: (j, i)),
            ],
            out_specs=pl.BlockSpec((tb, tb), lambda i, j: (i, j)),
        ),
        compiler_params=pltpu.CompilerParams(
            dimension_semantics=("parallel", "parallel")),
    )(w_bf16, w_bf16)


# ---------------------------------------------------------------------------
# Matmul + sigmoid.
# ---------------------------------------------------------------------------
def _matmul_sigmoid_resident_kernel(x_ref, a_ref, o_ref):
    """One (TM, Hp) row tile vs resident (Hp, Hp) weight; f32 MXU acc."""
    x = x_ref[...].astype(jnp.bfloat16)          # cast in-kernel (no HBM pass)
    y = jnp.dot(x, a_ref[...], preferred_element_type=jnp.float32)
    o_ref[...] = jax.nn.sigmoid(y).astype(o_ref.dtype)


def _matmul_sigmoid_ktiled_kernel(x_ref, a_ref, o_ref, acc_ref):
    """K-reduction fallback: f32 VMEM accumulator, sigmoid on the last K step."""
    @pl.when(pl.program_id(2) == 0)
    def _():
        acc_ref[...] = jnp.zeros_like(acc_ref)

    x = x_ref[...].astype(jnp.bfloat16)
    acc_ref[...] += jnp.dot(x, a_ref[...], preferred_element_type=jnp.float32)

    @pl.when(pl.program_id(2) == pl.num_programs(2) - 1)
    def _():
        o_ref[...] = jax.nn.sigmoid(acc_ref[...]).astype(o_ref.dtype)


def ease_forward(x, weight):
    """x: (..., H); weight: (H, H) raw (un-symmetrized). Returns sigmoid(x @ sym(W))."""
    h = weight.shape[0]
    lead_shape = x.shape[:-1]
    out_dtype = x.dtype
    x2d = x.reshape(-1, h)
    m = x2d.shape[0]

    # Pad hidden dim to a lane-dense multiple of 128 (zero pad; sliced off later).
    hp = _round_up(h, _LANE)
    if hp != h:
        weight = jnp.pad(weight, ((0, hp - h), (0, hp - h)))
        x2d = jnp.pad(x2d, ((0, 0), (0, hp - h)))

    # bf16 weight in/out: symmetrization is pure selection, so this is exact
    # w.r.t. the later bf16 MXU operand, and it halves the one-shot DMA.
    a = _symmetrize(weight.astype(jnp.bfloat16), hp)

    x_bytes = jnp.dtype(x2d.dtype).itemsize
    out_bytes = jnp.dtype(out_dtype).itemsize
    w_bytes = hp * hp * 2
    m_pad = _round_up(m, _SUBLANE)

    budget = _vmem_budget_bytes()
    vmem_limit = int(budget)

    cost = pl.CostEstimate(
        flops=2 * m * hp * hp,
        bytes_accessed=m * hp * (x_bytes + out_bytes) + w_bytes,
        transcendentals=m * hp,
    )

    # Per M-row VMEM cost for the resident path: double-buffered x tile,
    # double-buffered out tile, plus the in-kernel bf16 copy of the x tile.
    per_row = hp * (2 * x_bytes + 2 * out_bytes + 2)
    tm_need = min(256, m_pad)
    tm_max_db = (budget - 2 * w_bytes) // per_row if budget > 2 * w_bytes else 0
    tm_max_sb = (budget - 1 * w_bytes) // per_row if budget > 1 * w_bytes else 0

    def _resident_call(tm_max, single_buffer_a):
        tm = min(_TM_CAP, int(tm_max), m_pad)
        if tm >= 2 * _LANE:
            tm = (tm // _LANE) * _LANE          # MXU-friendly TM
        else:
            tm = max((tm // _SUBLANE) * _SUBLANE, _SUBLANE)
        a_kwargs = {}
        if single_buffer_a:
            # Constant index_map -> never re-fetched; single-buffer it to
            # halve the VMEM footprint of the resident weight.
            a_kwargs["pipeline_mode"] = pl.Buffered(1)
        a_spec = pl.BlockSpec((hp, hp), lambda i: (0, 0), **a_kwargs)
        return pl.pallas_call(
            _matmul_sigmoid_resident_kernel,
            out_shape=jax.ShapeDtypeStruct((m, hp), out_dtype),
            grid_spec=pltpu.PrefetchScalarGridSpec(
                num_scalar_prefetch=0,
                grid=(pl.cdiv(m, tm),),
                in_specs=[
                    pl.BlockSpec((tm, hp), lambda i: (i, 0)),  # x streamed
                    a_spec,                                    # A resident
                ],
                out_specs=pl.BlockSpec((tm, hp), lambda i: (i, 0)),
            ),
            compiler_params=pltpu.CompilerParams(
                dimension_semantics=("parallel",),
                vmem_limit_bytes=vmem_limit),
            cost_estimate=cost,
        )(x2d, a)

    def _ktiled_call():
        tm = max((min(256, m_pad) // _SUBLANE) * _SUBLANE, _SUBLANE)
        tn = _pick_divisor_tile(hp)
        tk = _pick_divisor_tile(hp)
        return pl.pallas_call(
            _matmul_sigmoid_ktiled_kernel,
            out_shape=jax.ShapeDtypeStruct((m, hp), out_dtype),
            grid_spec=pltpu.PrefetchScalarGridSpec(
                num_scalar_prefetch=0,
                grid=(pl.cdiv(m, tm), hp // tn, hp // tk),
                in_specs=[
                    pl.BlockSpec((tm, tk), lambda i, j, k: (i, k)),
                    pl.BlockSpec((tk, tn), lambda i, j, k: (k, j)),
                ],
                out_specs=pl.BlockSpec((tm, tn), lambda i, j, k: (i, j)),
                scratch_shapes=[pltpu.VMEM((tm, tn), jnp.float32)],
            ),
            compiler_params=pltpu.CompilerParams(
                dimension_semantics=("parallel", "parallel", "arbitrary"),
                vmem_limit_bytes=vmem_limit),
            cost_estimate=cost,
        )(x2d, a)

    if tm_max_db >= tm_need:
        out = _resident_call(tm_max_db, single_buffer_a=False)
    elif tm_max_sb >= tm_need:
        out = _resident_call(tm_max_sb, single_buffer_a=True)
    else:
        out = _ktiled_call()

    if hp != h:
        out = out[:, :h]   # padded cols hold sigmoid(0)=0.5 -> must stay sliced off
    return out.reshape(*lead_shape, h)


def ease_reference(x, weight):
    """Pure-JAX f32 reference matching the PyTorch module."""
    a = jnp.triu(weight) + jnp.triu(weight, 1).T
    return jax.nn.sigmoid(x @ a)


if __name__ == "__main__":
    hidden_size = 32
    batch, seq = 2, 8

    key = jax.random.PRNGKey(0)
    k_w, k_x = jax.random.split(key)

    # Deterministic parameter init: ~ torch.rand(H, H).fill_diagonal_(0)
    weight = jax.random.uniform(k_w, (hidden_size, hidden_size),
                                dtype=jnp.float32)
    weight = weight * (1.0 - jnp.eye(hidden_size, dtype=jnp.float32))

    x = jax.random.uniform(k_x, (batch, seq, hidden_size), dtype=jnp.float32)

    ease_fn = jax.jit(ease_forward)
    y = ease_fn(x, weight)
    jax.block_until_ready(y)

    y_ref = ease_reference(x, weight)
    assert y.shape == x.shape
    # bf16 matmul operands (f32 accumulation) -> loosened tolerance vs f32 ref.
    assert jnp.allclose(y, y_ref, atol=1e-2, rtol=1e-2), "mismatch vs reference"

    print("KERNEL_OK")
</pallas_src>

<mosaic_0001>
module attributes {stable_mosaic.version = 11 : i64} {
  func.func @_symmetrize_kernel(%arg0: i32, %arg1: i32, %arg2: memref<128x128xbf16, #tpu.memory_space<vmem>>, %arg3: memref<128x128xbf16, #tpu.memory_space<vmem>>, %arg4: memref<128x128xbf16, #tpu.memory_space<vmem>>) attributes {dimension_semantics = [#tpu.dimension_semantics<parallel>, #tpu.dimension_semantics<parallel>], iteration_bounds = array<i64: 1, 1>, scalar_prefetch = 0 : i64, scratch_operands = 0 : i64, tpu.core_type = #tpu.core_type<tc>, window_params = [{transform_indices = @transform_0, window_bounds = array<i64: 128, 128>}, {transform_indices = @transform_1, window_bounds = array<i64: 128, 128>}, {transform_indices = @transform_2, window_bounds = array<i64: 128, 128>}]} {
    %0 = tpu.iota {dimensions = array<i32: 0>} : vector<128x128xi32>
    %c128_i32 = arith.constant 128 : i32
    %1 = arith.muli %arg0, %c128_i32 : i32
    %2 = vector.broadcast %1 : i32 to vector<128x128xi32>
    %3 = arith.addi %0, %2 : vector<128x128xi32>
    %4 = tpu.iota {dimensions = array<i32: 1>} : vector<128x128xi32>
    %c128_i32_0 = arith.constant 128 : i32
    %5 = arith.muli %arg1, %c128_i32_0 : i32
    %6 = vector.broadcast %5 : i32 to vector<128x128xi32>
    %7 = arith.addi %4, %6 : vector<128x128xi32>
    %8 = arith.cmpi sge, %7, %3 : vector<128x128xi32>
    %c0 = arith.constant 0 : index
    %c0_1 = arith.constant 0 : index
    %9 = vector.load %arg2[%c0, %c0_1] : memref<128x128xbf16, #tpu.memory_space<vmem>>, vector<128x128xbf16>
    %c0_2 = arith.constant 0 : index
    %c0_3 = arith.constant 0 : index
    %10 = vector.load %arg3[%c0_2, %c0_3] : memref<128x128xbf16, #tpu.memory_space<vmem>>, vector<128x128xbf16>
    %11 = tpu.transpose %10, [1, 0] : vector<128x128xbf16> -> vector<128x128xbf16>
    %12 = arith.select %8, %9, %11 : vector<128x128xi1>, vector<128x128xbf16>
    %c0_4 = arith.constant 0 : index
    %c0_5 = arith.constant 0 : index
    %13 = vector.load %arg4[%c0_4, %c0_5] : memref<128x128xbf16, #tpu.memory_space<vmem>>, vector<128x128xbf16>
    tpu.vector_store %arg4[%c0_4, %c0_5], %12 {strides = array<i32>} : memref<128x128xbf16, #tpu.memory_space<vmem>>, vector<128x128xbf16>,
    return
  }
  func.func @transform_0(%arg0: i32, %arg1: i32) -> (i32, i32) {
    %c0_i32 = arith.constant 0 : i32
    return %arg0, %arg1 : i32, i32
  }
  func.func @transform_1(%arg0: i32, %arg1: i32) -> (i32, i32) {
    %c0_i32 = arith.constant 0 : i32
    return %arg1, %arg0 : i32, i32
  }
  func.func @transform_2(%arg0: i32, %arg1: i32) -> (i32, i32) {
    %c0_i32 = arith.constant 0 : i32
    return %arg0, %arg1 : i32, i32
  }
}

module attributes {stable_mosaic.version = 11 : i64} {
  func.func @_matmul_sigmoid_resident_kernel(%arg0: i32, %arg1: memref<16x128xf32, #tpu.memory_space<vmem>>, %arg2: memref<128x128xbf16, #tpu.memory_space<vmem>>, %arg3: memref<16x128xf32, #tpu.memory_space<vmem>>) attributes {dimension_semantics = [#tpu.dimension_semantics<parallel>], iteration_bounds = array<i64: 1>, scalar_prefetch = 0 : i64, scratch_operands = 0 : i64, tpu.core_type = #tpu.core_type<tc>, window_params = [{transform_indices = @transform_0, window_bounds = array<i64: 16, 128>}, {pipeline_mode = #tpu.pipeline_mode<synchronous>, transform_indices = @transform_1, window_bounds = array<i64: 128, 128>}, {transform_indices = @transform_2, window_bounds = array<i64: 16, 128>}]} {
    %c0 = arith.constant 0 : index
    %c0_0 = arith.constant 0 : index
    %0 = vector.load %arg1[%c0, %c0_0] : memref<16x128xf32, #tpu.memory_space<vmem>>, vector<16x128xf32>
    %1 = arith.truncf %0 : vector<16x128xf32> to vector<16x128xbf16>
    %c0_1 = arith.constant 0 : index
    %c0_2 = arith.constant 0 : index
    %2 = vector.load %arg2[%c0_1, %c0_2] : memref<128x128xbf16, #tpu.memory_space<vmem>>, vector<128x128xbf16>
    %cst = arith.constant dense<0.000000e+00> : vector<16x128xf32>
    %3 = tpu.matmul %1, %2, %cst {dimension_numbers = #tpu.dot_dimension_numbers<[1], [0], [0], [1], [0, 0, 1, 1], [], []>} : vector<16x128xbf16>, vector<128x128xbf16>, vector<16x128xf32> -> vector<16x128xf32>
    %4 = arith.negf %3 : vector<16x128xf32>
    %5 = math.exp %4 : vector<16x128xf32>
    %cst_3 = arith.constant 1.000000e+00 : f32
    %6 = vector.broadcast %cst_3 : f32 to vector<16x128xf32>
    %7 = arith.addf %6, %5 : vector<16x128xf32>
    %8 = arith.divf %6, %7 : vector<16x128xf32>
    %c0_4 = arith.constant 0 : index
    %c0_5 = arith.constant 0 : index
    %9 = vector.load %arg3[%c0_4, %c0_5] : memref<16x128xf32, #tpu.memory_space<vmem>>, vector<16x128xf32>
    tpu.vector_store %arg3[%c0_4, %c0_5], %8 {strides = array<i32>} : memref<16x128xf32, #tpu.memory_space<vmem>>, vector<16x128xf32>,
    return
  }
  func.func @transform_0(%arg0: i32) -> (i32, i32) {
    %c0_i32 = arith.constant 0 : i32
    %c0_i32_0 = arith.constant 0 : i32
    return %arg0, %c0_i32 : i32, i32
  }
  func.func @transform_1(%arg0: i32) -> (i32, i32) {
    %c0_i32 = arith.constant 0 : i32
    %c0_i32_0 = arith.constant 0 : i32
    %c0_i32_1 = arith.constant 0 : i32
    return %c0_i32, %c0_i32_0 : i32, i32
  }
  func.func @transform_2(%arg0: i32) -> (i32, i32) {
    %c0_i32 = arith.constant 0 : i32
    %c0_i32_0 = arith.constant 0 : i32
    return %arg0, %c0_i32 : i32, i32
  }
}

</mosaic_0001>

<bundles_post_ra>
// kernel: ease_forward.3
= control target key start
LH: loop header
LB: loop body
LE: loop exit
PB: predicated region body
PF: predicated region fallthrough
CT: control target
= control target key end

     0   :  { %v195_v0 = vmov 0.0   ;;  %vm196_vm0 = vmmov 0   ;;  %s248_s1 = inlined_call_operand.vmem [shape: bf16[128,128], index: 1, kind: input, shape index: {}]   ;;  %s249_s0 = inlined_call_operand.vmem [shape: f32[16,128], index: 0, kind: input, shape index: {}]   ;;  %s250_s2 = inlined_call_operand.vmem [shape: f32[16,128], index: 2, kind: output, shape index: {}]  }
   0x1   :  { %157 = vmatprep.subr.bf16.mxu0 %v195_v0  ;;  %v179_v1 = vld [vmem:[%s248_s1 + $0x38] sm:$0xff]   ;;  %173 = vmatprep.mubr.msk.bf16.mxu0 %vm196_vm0, %v195_v0  ;;  %v180_v2 = vld [vmem:[%s248_s1 + $0x30] sm:$0xff]   ;;  %v181_v3 = vld [vmem:[%s248_s1 + $0x28] sm:$0xff]  }
   0x2   :  { %158 = vmatpush3.bf16.msra.mxu0 %v179_v1  ;;  %v182_v4 = vld [vmem:[%s248_s1 + $0x20] sm:$0xff]   ;;  %v183_v5 = vld [vmem:[%s248_s1 + $0x18] sm:$0xff]   ;;  %v184_v6 = vld [vmem:[%s248_s1 + $0x10] sm:$0xff]  }
   0x3   :  { %159 = vmatprep.subr.bf16.mxu0 %v195_v0  ;;  %v185_v7 = vld [vmem:[%s248_s1 + $0x8] sm:$0xff]   ;;  %v186_v8 = vld [vmem:[%s248_s1] sm:$0xff]  }
   0x4   :  { %v12_v9 = vld [vmem:[%s249_s0] sm:$0xff]  ;;  %v13_v10 = vld [vmem:[%s249_s0 + $0x8] sm:$0xff] }
   0x5   :  { %v14_v11 = vpack.c.bf16 %v13_v10, %v12_v9 }
   0x6   :  { %160 = vmatpush3.bf16.msra.mxu0 %v180_v2 }
   0x7   :  { %161 = vmatprep.subr.bf16.mxu0 %v195_v0 }
   0xa   :  { %162 = vmatpush3.bf16.msra.mxu0 %v181_v3 }
   0xb   :  { %163 = vmatprep.subr.bf16.mxu0 %v195_v0 }
   0xe   :  { %164 = vmatpush3.bf16.msra.mxu0 %v182_v4 }
   0xf   :  { %165 = vmatprep.subr.bf16.mxu0 %v195_v0 }
  0x12   :  { %166 = vmatpush3.bf16.msra.mxu0 %v183_v5 }
  0x13   :  { %167 = vmatprep.subr.bf16.mxu0 %v195_v0 }
  0x16   :  { %168 = vmatpush3.bf16.msra.mxu0 %v184_v6 }
  0x17   :  { %169 = vmatprep.subr.bf16.mxu0 %v195_v0 }
  0x1a   :  { %170 = vmatpush3.bf16.msra.mxu0 %v185_v7 }
  0x1b   :  { %171 = vmatprep.subr.bf16.mxu0 %v195_v0 }
  0x1e   :  { %172 = vmatpush3.bf16.msra.mxu0 %v186_v8 }
  0x21   :  { %174 = vmatmul.mubr.bf16.vlgmr.msra.gmra.mxu0 %v14_v11 }
  0xe1   :  { %v113_v12 = vpop.f32.mrf.mxu0 }
  0xe2   :  { %v146_v13 = vmul.f32 -1.442695, %v113_v12 }
  0xe3   :  { %v175_v14 = vpop.f32.mrf.mxu0 }
  0xe4   :  { %187 = vpow2.f32 %v146_v13 }
  0xe5   :  { %v116_v15 = vpop.f32.mrf.mxu0 }
  0xe6   :  { %v147_v16 = vmul.f32 -1.442695, %v116_v15 }
  0xe7   :  { %v176_v17 = vpop.f32.mrf.mxu0 }
  0xe8   :  { %189 = vpow2.f32 %v147_v16 }
  0xf1   :  { %v188_v18 = vpop.eup %187 }
  0xf2   :  { %v126_v19 = vadd.f32 1.0, %v188_v18 }
  0xf4   :  { %191 = vrcp.f32 %v126_v19 }
  0xf5   :  { %v190_v20 = vpop.eup %189 }
  0xf6   :  { %v127_v21 = vadd.f32 1.0, %v190_v20 }
  0xf8   :  { %193 = vrcp.f32 %v127_v21 }
 0x101   :  { %v192_v22 = vpop.eup %191 }
 0x102   :  { %132 = vst [vmem:[%s250_s2] sm:$0xff] %v192_v22 }
 0x105   :  { %v194_v23 = vpop.eup %193 }
 0x106   :  { %133 = vst [vmem:[%s250_s2 + $0x8] sm:$0xff] %v194_v23 }

// kernel: ease_forward.2
= control target key start
LH: loop header
LB: loop body
LE: loop exit
PB: predicated region body
PF: predicated region fallthrough
CT: control target
= control target key end

     0   :  { %v11_v8 = vlaneseq  ;;  %s474_s1 = inlined_call_operand.vmem [shape: bf16[128,128], index: 1, kind: input, shape index: {}, may-alias: {0,1}]   ;;  %s475_s0 = inlined_call_operand.vmem [shape: bf16[128,128], index: 0, kind: input, shape index: {}, may-alias: {0,1}]   ;;  %s476_s2 = inlined_call_operand.vmem [shape: bf16[128,128], index: 2, kind: output, shape index: {}]  }
   0x1   :  { %v295_v0 = vld [vmem:[%s474_s1] sm:$0xff]   ;;  %v296_v1 = vld [vmem:[%s474_s1 + $0x8] sm:$0xff]   ;;  %v297_v2 = vld [vmem:[%s474_s1 + $0x10] sm:$0xff]  }
   0x2   :  { %147 = vxpose.xlu0.c.b16.start [1/8] %v295_v0, 128  ;;  %v298_v3 = vld [vmem:[%s474_s1 + $0x18] sm:$0xff]   ;;  %v299_v4 = vld [vmem:[%s474_s1 + $0x20] sm:$0xff]   ;;  %v300_v5 = vld [vmem:[%s474_s1 + $0x28] sm:$0xff]   ;;  %v342_v9 = vshrl.u32 %v11_v8, 7  ;;  %v344_v10 = vand.u32 127, %v11_v8 }
   0x3   :  { %v301_v6 = vld [vmem:[%s474_s1 + $0x30] sm:$0xff]   ;;  %v302_v7 = vld [vmem:[%s474_s1 + $0x38] sm:$0xff]   ;;  %v67_v14 = vld [vmem:[%s475_s0] sm:$0xf] }
   0x4   :  { %v13_v11 = vadd.s32 8, %v342_v9  ;;  %vm51_vm0 = vcmp.ge.s32.totalorder %v344_v10, %v342_v9  ;;  %v14_v12 = vadd.s32 16, %v342_v9  ;;  %v15_v13 = vadd.s32 24, %v342_v9  ;;  %v68_v15 = vld [vmem:[%s475_s0 + $0x4] sm:$0xf] }
   0x5   :  { %vm163_vm2 = vmpackc.low %vm51_vm0, %vm51_vm0  ;;  %v16_v17 = vadd.s32 32, %v342_v9  ;;  %v17_v20 = vadd.s32 40, %v342_v9  ;;  %v69_v23 = vld [vmem:[%s475_s0 + $0x8] sm:$0xf]  ;;  %v70_v24 = vld [vmem:[%s475_s0 + $0xc] sm:$0xf] }
   0x6   :  { %148 = vxpose.xlu0.c.b16.cont [2/8] %v296_v1, 128  ;;  %vm52_vm1 = vcmp.ge.s32.totalorder %v344_v10, %v13_v11  ;;  %vm53_vm4 = vcmp.ge.s32.totalorder %v344_v10, %v14_v12  ;;  %vm54_vm5 = vcmp.ge.s32.totalorder %v344_v10, %v15_v13  ;;  %v18_v26 = vadd.s32 48, %v342_v9  ;;  %v71_v32 = vld [vmem:[%s475_s0 + $0x10] sm:$0xf]  ;;  %v72_v33 = vld [vmem:[%s475_s0 + $0x14] sm:$0xf] }
   0x7   :  { %vm164_vm3 = vmpackc.low %vm52_vm1, %vm52_vm1  ;;  %vm55_vm8 = vcmp.ge.s32.totalorder %v344_v10, %v16_v17  ;;  %vm56_vm9 = vcmp.ge.s32.totalorder %v344_v10, %v17_v20  ;;  %v19_v29 = vadd.s32 56, %v342_v9  ;;  %v20_v35 = vadd.s32 64, %v342_v9  ;;  %v73_v41 = vld [vmem:[%s475_s0 + $0x18] sm:$0xf]  ;;  %v74_v42 = vld [vmem:[%s475_s0 + $0x1c] sm:$0xf] }
   0x8   :  { %vm165_vm6 = vmpackc.low %vm53_vm4, %vm53_vm4  ;;  %vm57_vm12 = vcmp.ge.s32.totalorder %v344_v10, %v18_v26  ;;  %v21_v38 = vadd.s32 72, %v342_v9  ;;  %v22_v44 = vadd.s32 80, %v342_v9  ;;  %v23_v47 = vadd.s32 88, %v342_v9  ;;  %v75_v50 = vld [vmem:[%s475_s0 + $0x20] sm:$0xf] }
   0x9   :  { %vm166_vm7 = vmpackc.low %vm54_vm5, %vm54_vm5  ;;  %vm58_vm13 = vcmp.ge.s32.totalorder %v344_v10, %v19_v29  ;;  %vm59_vm0 = vcmp.ge.s32.totalorder %v344_v10, %v20_v35  ;;  %v76_v51 = vld [vmem:[%s475_s0 + $0x24] sm:$0xf]  ;;  %v24_v53 = vadd.s32 96, %v342_v9  ;;  %v25_v56 = vadd.s32 104, %v342_v9  ;;  %v77_v59 = vld [vmem:[%s475_s0 + $0x28] sm:$0xf] }
   0xa   :  { %149 = vxpose.xlu0.c.b16.cont [3/8] %v297_v2, 128  ;;  %vm167_vm10 = vmpackc.low %vm55_vm8, %vm55_vm8  ;;  %vm60_vm1 = vcmp.ge.s32.totalorder %v344_v10, %v21_v38  ;;  %vm61_vm4 = vcmp.ge.s32.totalorder %v344_v10, %v22_v44  ;;  %vm62_vm5 = vcmp.ge.s32.totalorder %v344_v10, %v23_v47  ;;  %v78_v60 = vld [vmem:[%s475_s0 + $0x2c] sm:$0xf]  ;;  %v26_v62 = vadd.s32 112, %v342_v9  ;;  %v81_v12 = vld [vmem:[%s475_s0 + $0x38] sm:$0xf] }
   0xb   :  { %vm168_vm11 = vmpackc.low %vm56_vm9, %vm56_vm9  ;;  %vm63_vm8 = vcmp.ge.s32.totalorder %v344_v10, %v24_v53  ;;  %vm64_vm9 = vcmp.ge.s32.totalorder %v344_v10, %v25_v56  ;;  %v27_v1 = vadd.s32 120, %v342_v9  ;;  %v82_v13 = vld [vmem:[%s475_s0 + $0x3c] sm:$0xf] }
   0xc   :  { %vm169_vm14 = vmpackc.low %vm57_vm12, %vm57_vm12  ;;  %vm65_vm12 = vcmp.ge.s32.totalorder %v344_v10, %v26_v62 }
   0xd   :  { %vm170_vm15 = vmpackc.low %vm58_vm13, %vm58_vm13  ;;  %vm66_vm13 = vcmp.ge.s32.totalorder %v344_v10, %v27_v1 }
   0xe   :  { %150 = vxpose.xlu0.c.b16.cont [4/8] %v298_v3, 128 }
  0x12   :  { %151 = vxpose.xlu0.c.b16.cont [5/8] %v299_v4, 128  ;;  %v79_v4 = vld [vmem:[%s475_s0 + $0x30] sm:$0xf] }
  0x16   :  { %152 = vxpose.xlu0.c.b16.cont [6/8] %v300_v5, 128  ;;  %v80_v5 = vld [vmem:[%s475_s0 + $0x34] sm:$0xf] }
  0x1a   :  { %153 = vxpose.xlu0.c.b16.cont [7/8] %v301_v6, 128 }
  0x1e   :  { %154 = vxpose.xlu0.c.b16.end [8/8] %v302_v7, 128 }
  0x64   :  { %v155_v16 = vpop.trf.xlu0 }
  0x65   :  { %v279_v18 = vcombine.low %v155_v16, %v155_v16  ;;  %v280_v19 = vcombine.high %v155_v16, %v155_v16 }
  0x67   :  { %v235_v21 = vsel %vm163_vm2, %v67_v14, %v279_v18  ;;  %v236_v22 = vsel %vm164_vm3, %v68_v15, %v280_v19  ;;  %vm171_vm2 = vmpackc.low %vm59_vm0, %vm59_vm0 }
  0x68   :  { %251 = vst [vmem:[%s476_s2] sm:$0xf] %v235_v21  ;;  %252 = vst [vmem:[%s476_s2 + $0x4] sm:$0xf] %v236_v22  ;;  %v156_v25 = vpop.trf.xlu0 }
  0x69   :  { %v281_v27 = vcombine.low %v156_v25, %v156_v25  ;;  %v282_v28 = vcombine.high %v156_v25, %v156_v25  ;;  %vm172_vm3 = vmpackc.low %vm60_vm1, %vm60_vm1 }
  0x6b   :  { %v237_v30 = vsel %vm165_vm6, %v69_v23, %v281_v27  ;;  %v238_v31 = vsel %vm166_vm7, %v70_v24, %v282_v28  ;;  %vm173_vm6 = vmpackc.low %vm61_vm4, %vm61_vm4 }
  0x6c   :  { %253 = vst [vmem:[%s476_s2 + $0x8] sm:$0xf] %v237_v30  ;;  %254 = vst [vmem:[%s476_s2 + $0xc] sm:$0xf] %v238_v31  ;;  %v157_v34 = vpop.trf.xlu0 }
  0x6d   :  { %v283_v36 = vcombine.low %v157_v34, %v157_v34  ;;  %v284_v37 = vcombine.high %v157_v34, %v157_v34  ;;  %vm174_vm7 = vmpackc.low %vm62_vm5, %vm62_vm5 }
  0x6f   :  { %v239_v39 = vsel %vm167_vm10, %v71_v32, %v283_v36  ;;  %v240_v40 = vsel %vm168_vm11, %v72_v33, %v284_v37  ;;  %vm175_vm10 = vmpackc.low %vm63_vm8, %vm63_vm8 }
  0x70   :  { %255 = vst [vmem:[%s476_s2 + $0x10] sm:$0xf] %v239_v39  ;;  %256 = vst [vmem:[%s476_s2 + $0x14] sm:$0xf] %v240_v40  ;;  %v158_v43 = vpop.trf.xlu0 }
  0x71   :  { %v285_v45 = vcombine.low %v158_v43, %v158_v43  ;;  %v286_v46 = vcombine.high %v158_v43, %v158_v43  ;;  %vm176_vm11 = vmpackc.low %vm64_vm9, %vm64_vm9 }
  0x73   :  { %v241_v48 = vsel %vm169_vm14, %v73_v41, %v285_v45  ;;  %v242_v49 = vsel %vm170_vm15, %v74_v42, %v286_v46  ;;  %vm177_vm14 = vmpackc.low %vm65_vm12, %vm65_vm12 }
  0x74   :  { %257 = vst [vmem:[%s476_s2 + $0x18] sm:$0xf] %v241_v48  ;;  %258 = vst [vmem:[%s476_s2 + $0x1c] sm:$0xf] %v242_v49  ;;  %v159_v52 = vpop.trf.xlu0 }
  0x75   :  { %v287_v54 = vcombine.low %v159_v52, %v159_v52  ;;  %v288_v55 = vcombine.high %v159_v52, %v159_v52  ;;  %vm178_vm15 = vmpackc.low %vm66_vm13, %vm66_vm13 }
  0x77   :  { %v243_v57 = vsel %vm171_vm2, %v75_v50, %v287_v54  ;;  %v244_v58 = vsel %vm172_vm3, %v76_v51, %v288_v55 }
  0x78   :  { %259 = vst [vmem:[%s476_s2 + $0x20] sm:$0xf] %v243_v57  ;;  %260 = vst [vmem:[%s476_s2 + $0x24] sm:$0xf] %v244_v58  ;;  %v160_v61 = vpop.trf.xlu0 }
  0x79   :  { %v289_v63 = vcombine.low %v160_v61, %v160_v61  ;;  %v290_v0 = vcombine.high %v160_v61, %v160_v61 }
  0x7b   :  { %v245_v2 = vsel %vm173_vm6, %v77_v59, %v289_v63  ;;  %v246_v3 = vsel %vm174_vm7, %v78_v60, %v290_v0 }
  0x7c   :  { %261 = vst [vmem:[%s476_s2 + $0x28] sm:$0xf] %v245_v2  ;;  %262 = vst [vmem:[%s476_s2 + $0x2c] sm:$0xf] %v246_v3  ;;  %v161_v6 = vpop.trf.xlu0 }
  0x7d   :  { %v291_v7 = vcombine.low %v161_v6, %v161_v6  ;;  %v292_v8 = vcombine.high %v161_v6, %v161_v6 }
  0x7f   :  { %v247_v9 = vsel %vm175_vm10, %v79_v4, %v291_v7  ;;  %v248_v11 = vsel %vm176_vm11, %v80_v5, %v292_v8 }
  0x80   :  { %263 = vst [vmem:[%s476_s2 + $0x30] sm:$0xf] %v247_v9  ;;  %264 = vst [vmem:[%s476_s2 + $0x34] sm:$0xf] %v248_v11  ;;  %v162_v10 = vpop.trf.xlu0 }
  0x81   :  { %v293_v14 = vcombine.low %v162_v10, %v162_v10  ;;  %v294_v15 = vcombine.high %v162_v10, %v162_v10 }
  0x83   :  { %v249_v16 = vsel %vm177_vm14, %v81_v12, %v293_v14  ;;  %v250_v17 = vsel %vm178_vm15, %v82_v13, %v294_v15 }
  0x84   :  { %265 = vst [vmem:[%s476_s2 + $0x38] sm:$0xf] %v249_v16  ;;  %266 = vst [vmem:[%s476_s2 + $0x3c] sm:$0xf] %v250_v17 }

</bundles_post_ra>
